<compile_context>
chip_gen: v5e
topology: v5e:2x2
jax: 0.10.0
libtpu: 0.0.40
codegen_flags: <defaults>
</compile_context>

<pallas_src>
import functools

import jax
import jax.numpy as jnp
from jax import lax
from jax.experimental import pallas as pl
from jax.experimental.pallas import tpu as pltpu


def _round_up(v, m):
    return -(-v // m) * m


def _activation_fn(activation, activation_param):
    if activation == "relu":
        return lambda y: jnp.maximum(y, 0.0)
    if activation == "leaky_relu":
        return lambda y: jnp.where(y >= 0.0, y, activation_param * y)
    if activation == "elu":
        return lambda y: jnp.where(y >= 0.0, y,
                                   activation_param * (jnp.exp(y) - 1.0))
    if activation == "identity":
        return lambda y: y
    raise RuntimeError(f"Unknown activation function {activation}")


def _vmem_capacity_bytes():
    try:
        return int(pltpu.get_tpu_info().vmem_capacity_bytes)
    except Exception:
        return 64 * 1024 * 1024          # conservative (v7x-sized) fallback


def _choose_tiles(n, c, hw, itemsize, budget_bytes, min_groups):
    """Pick (tn, thw): batch-group block and lane tile for the streaming passes.

    The apply pass dominates the per-lane VMEM cost: double-buffered input +
    double-buffered output = 4 * tn * C * itemsize bytes per lane column.  The
    stats pass is lighter (2 * tn * C * itemsize per lane plus a fixed
    (C, <=512) f32 accumulator pair), so a single (tn, thw) serves both.
    """
    hw_pad = _round_up(hw, 128)
    unit = 4 * c * itemsize                       # bytes per lane, per tn

    def lanes_for(tn):
        return max(128, (budget_bytes // (unit * tn)) // 128 * 128)

    tn_cap = max(1, n // max(min_groups, 1))

    if hw_pad <= lanes_for(1):
        # Whole H*W row fits: keep thw = hw and grow the batch block with the
        # largest divisor of N that fits the budget (capped so at least
        # `min_groups` batch groups remain on the "parallel" grid axis).
        thw = hw
        tn = 1
        for d in range(tn_cap, 0, -1):
            if n % d == 0 and hw_pad <= lanes_for(d):
                tn = d
                break
    else:
        # H*W does not fit: a modest batch block amortizes the accumulator
        # read-modify-write (helps v5e's single vector-store slot); the rest
        # of the budget goes to the lane tile (multiple of 128, < hw).
        tn = 1
        for d in (4, 2):
            if d <= tn_cap and n % d == 0 and lanes_for(d) >= 512:
                tn = d
                break
        thw = lanes_for(tn)
    return tn, thw


# ----------------------------------------------------------------------------
# Fused single-pass kernel: x fully VMEM-resident, stats + affine + activation.
# ----------------------------------------------------------------------------
def _make_fused_kernel(l_total, eps, renorm, activation, activation_param):
    act = _activation_fn(activation, activation_param)

    def kernel(x_ref, p_ref, o_ref):
        x = x_ref[...]                       # (N, C, HW), input dtype
        rm = p_ref[0]                        # (C, 1) f32 running mean
        rv = p_ref[1]                        # (C, 1) f32 running var
        wt = p_ref[2]                        # (C, 1) f32 weight
        bs = p_ref[3]                        # (C, 1) f32 bias

        # Batch stats on running_mean-shifted values (less cancellation).
        xc = x - rm                          # promoted to f32
        if x.shape[0] == 1:
            xp = xc[0]
            xp2 = xp * xp
        else:
            xp = jnp.sum(xc, axis=0)
            xp2 = jnp.sum(xc * xc, axis=0)
        sum_c = jnp.sum(xp, axis=1, keepdims=True)    # (C, 1)
        sq_c = jnp.sum(xp2, axis=1, keepdims=True)

        mean_c = sum_c / l_total                      # mean_b - running_mean
        var_b = jnp.maximum(sq_c / l_total - mean_c * mean_c, 0.0)
        var_u = jnp.maximum(
            (sq_c - l_total * mean_c * mean_c) / max(l_total - 1, 1), 0.0)

        if renorm:
            running_std = jnp.sqrt(rv + eps)
            r = jnp.sqrt(var_u + eps) / running_std
            d = mean_c / running_std
            w_eff = wt * r
            b_eff = bs + wt * d
        else:
            w_eff = wt
            b_eff = bs

        scale = w_eff / jnp.sqrt(var_b + eps)
        shift = b_eff - (rm + mean_c) * scale         # rm + mean_c == mean_b

        y = x * scale + shift
        o_ref[...] = act(y).astype(o_ref.dtype)

    return kernel


# ----------------------------------------------------------------------------
# Streaming pass 1: per-channel (running_mean-shifted) sum / sum-of-squares.
# Grid = (N/tn "parallel", HW-tiles "arbitrary"); per-group (C, 1) outputs.
# ----------------------------------------------------------------------------
def _make_stats_kernel(hw, thw, tn, acc_w):
    ragged = (hw % thw) != 0
    n_col = thw // acc_w
    rem = thw - n_col * acc_w

    def _accumulate(acc_ref, acc_sq_ref, xp, xp2):
        # Fold the (C, thw) plane into fixed-width (C, acc_w) accumulators
        # (pure VPU adds; the single XLU reduce happens once per batch group).
        for j in range(n_col):
            sl = slice(j * acc_w, (j + 1) * acc_w)
            acc_ref[...] += xp[:, sl]
            acc_sq_ref[...] += xp2[:, sl]
        if rem:
            acc_ref[:, :rem] += xp[:, n_col * acc_w:]
            acc_sq_ref[:, :rem] += xp2[:, n_col * acc_w:]

    def kernel(x_ref, rm_ref, sum_ref, sq_ref, acc_ref, acc_sq_ref):
        li = pl.program_id(1)
        last = pl.num_programs(1) - 1

        @pl.when(li == 0)
        def _():
            acc_ref[...] = jnp.zeros_like(acc_ref)
            acc_sq_ref[...] = jnp.zeros_like(acc_sq_ref)

        x = x_ref[...]                       # (tn, C, thw), input dtype
        rm = rm_ref[...]                     # (C, 1), f32
        xc = x - rm                          # promoted to f32, mean-shifted
        if tn == 1:
            xp = xc[0]
            xp2 = xp * xp
        else:
            xp = jnp.sum(xc, axis=0)
            xp2 = jnp.sum(xc * xc, axis=0)

        if ragged:
            # Only the final HW tile reads past H*W: keep the dense tiles on a
            # clean VPU-only path and mask just the last one.
            @pl.when(li != last)
            def _():
                _accumulate(acc_ref, acc_sq_ref, xp, xp2)

            @pl.when(li == last)
            def _():
                lane = lax.broadcasted_iota(jnp.int32, xp.shape, 1)
                valid = (li * thw + lane) < hw
                _accumulate(acc_ref, acc_sq_ref,
                            jnp.where(valid, xp, 0.0),
                            jnp.where(valid, xp2, 0.0))
        else:
            _accumulate(acc_ref, acc_sq_ref, xp, xp2)

        @pl.when(li == last)
        def _():
            # Single cross-lane (XLU) reduction + lane-sparse store per group.
            sum_ref[0] = jnp.sum(acc_ref[...], axis=1, keepdims=True)
            sq_ref[0] = jnp.sum(acc_sq_ref[...], axis=1, keepdims=True)

    return kernel


# ----------------------------------------------------------------------------
# Streaming pass 2: fused per-channel affine (folded batch-renorm) + activation.
# ----------------------------------------------------------------------------
def _make_apply_kernel(activation, activation_param):
    act = _activation_fn(activation, activation_param)

    def kernel(x_ref, p_ref, o_ref):
        x = x_ref[...]                       # (tn, C, thw), input dtype
        scale = p_ref[0]                     # (C, 1), f32
        shift = p_ref[1]                     # (C, 1), f32
        y = x * scale + shift                # promotes to f32
        o_ref[...] = act(y).astype(o_ref.dtype)

    return kernel


# ----------------------------------------------------------------------------
# Wrapper
# ----------------------------------------------------------------------------
@functools.partial(
    jax.jit,
    static_argnames=("eps", "momentum", "activation", "activation_param",
                     "training", "renorm", "vmem_budget_bytes", "allow_fused"),
)
def abr_forward(x_nchw, weight, bias, running_mean, running_var, *,
                eps=1e-5, momentum=0.0, activation="leaky_relu",
                activation_param=0.01, training=True, renorm=True,
                vmem_budget_bytes=None, allow_fused=True):
    if momentum != 0.0:
        # TODO(synk): running_mean/running_var buffer updates are a stateful
        # side effect of the PyTorch module; this functional kernel only
        # supports the module default momentum=0.0 (buffers unchanged).
        raise NotImplementedError("abr_forward only supports momentum == 0.0")
    if activation not in ("relu", "leaky_relu", "elu", "identity"):
        raise RuntimeError(f"Unknown activation function {activation}")

    n, c, h, w = x_nchw.shape
    hw = h * w
    l_total = n * hw
    itemsize = jnp.dtype(x_nchw.dtype).itemsize

    # --- hardware-aware VMEM budgeting ---------------------------------------
    vmem_cap = _vmem_capacity_bytes()            # 64 MiB v7x, 128 MiB v5e/v6e
    headroom = 8 * 1024 * 1024
    if vmem_budget_bytes is None:
        budget = min(48 * 1024 * 1024, max(16 * 1024 * 1024, vmem_cap // 3))
    else:
        budget = int(vmem_budget_bytes)
    budget = max(4 * 1024, min(budget, vmem_cap - 2 * headroom))
    vmem_limit = int(min(vmem_cap - headroom,
                         max(32 * 1024 * 1024, 2 * budget)))

    # Native NCHW layout; only free reshapes (no transposes, no HBM copies).
    x_r = x_nchw.reshape(n, c, hw)
    rm32 = running_mean.astype(jnp.float32)
    rv32 = running_var.astype(jnp.float32)
    w32 = weight.astype(jnp.float32)
    b32 = bias.astype(jnp.float32)

    # --- fused single-pass path (x fully VMEM-resident) ----------------------
    # HBM traffic: 2x tensor (one read + one write) instead of 3x.  The
    # threshold budgets ~(2*itemsize + 20) bytes/element for the in/out
    # buffers plus whole-array f32 temporaries inside the gridless kernel;
    # larger activations fall back to the streaming two-pass path.
    fused_peak = n * c * hw * (2 * itemsize + 20) + 16 * c * 4
    if training and allow_fused and fused_peak <= (vmem_cap - headroom):
        params4 = jnp.stack([rm32, rv32, w32, b32])[:, :, None]   # (4, C, 1)
        y_r = pl.pallas_call(
            _make_fused_kernel(l_total, eps, renorm, activation,
                               activation_param),
            out_shape=jax.ShapeDtypeStruct((n, c, hw), x_r.dtype),
            compiler_params=pltpu.CompilerParams(
                vmem_limit_bytes=int(vmem_cap - headroom)),
        )(x_r, params4)
        return y_r.reshape(n, c, h, w)

    # --- streaming two-pass path ---------------------------------------------
    # Keep >= 2 batch groups when possible so the "parallel" axis can feed
    # both v7x TensorCores (free on single-TC v5e/v6e: one extra grid step).
    min_groups = 2 if n >= 2 else 1
    tn, thw = _choose_tiles(n, c, hw, itemsize, budget, min_groups)
    g = n // tn
    n_hw = -(-hw // thw)
    acc_w = min(512, thw)
    # Guarantee the limit covers the actual working set (huge-C edge case).
    ws_est = 4 * tn * c * itemsize * thw + 2 * c * acc_w * 4 + (1 << 20)
    vmem_limit = int(min(vmem_cap - headroom, max(vmem_limit, ws_est)))

    if training:
        # --- pass 1: per-channel batch statistics ----------------------------
        sums, sqs = pl.pallas_call(
            _make_stats_kernel(hw, thw, tn, acc_w),
            out_shape=(jax.ShapeDtypeStruct((g, c, 1), jnp.float32),
                       jax.ShapeDtypeStruct((g, c, 1), jnp.float32)),
            grid=(g, n_hw),
            in_specs=[pl.BlockSpec((tn, c, thw), lambda gi, li: (gi, 0, li)),
                      pl.BlockSpec((c, 1), lambda gi, li: (0, 0))],
            out_specs=(pl.BlockSpec((1, c, 1), lambda gi, li: (gi, 0, 0)),
                       pl.BlockSpec((1, c, 1), lambda gi, li: (gi, 0, 0))),
            scratch_shapes=[pltpu.VMEM((c, acc_w), jnp.float32),
                            pltpu.VMEM((c, acc_w), jnp.float32)],
            compiler_params=pltpu.CompilerParams(
                dimension_semantics=("parallel", "arbitrary"),
                vmem_limit_bytes=vmem_limit),
        )(x_r, rm32[:, None])

        # Tiny (G, C) cross-group reduction in plain XLA.
        sum_c = jnp.sum(sums[:, :, 0], axis=0)        # sum of (x - rm)
        sq_c = jnp.sum(sqs[:, :, 0], axis=0)          # sum of (x - rm)^2
        mean_c = sum_c / l_total
        mean_b = rm32 + mean_c
        var_biased = jnp.maximum(sq_c / l_total - mean_c * mean_c, 0.0)
        var_unbiased = jnp.maximum(
            (sq_c - l_total * mean_c * mean_c) / max(l_total - 1, 1), 0.0)

        if renorm:
            running_std = jnp.sqrt(rv32 + eps)
            r = jnp.sqrt(var_unbiased + eps) / running_std
            d = mean_c / running_std           # == (mean_b - running_mean)/std
            w_eff = w32 * r
            b_eff = b32 + w32 * d
        else:
            w_eff, b_eff = w32, b32
        norm_mean, norm_var = mean_b, var_biased
    else:
        w_eff, b_eff = w32, b32
        norm_mean, norm_var = rm32, rv32

    # Fold batch-norm into a single per-channel affine: y = x*scale + shift.
    scale = w_eff / jnp.sqrt(norm_var + eps)
    shift = b_eff - norm_mean * scale
    params = jnp.stack([scale, shift])[:, :, None]    # (2, C, 1) f32

    # --- pass 2: fused normalization + activation ----------------------------
    # TODO(synk): sweep pl.Buffered(3) on these specs if a trace ever shows
    # exposed DMA at short grid extents (low priority per review).
    y_r = pl.pallas_call(
        _make_apply_kernel(activation, activation_param),
        out_shape=jax.ShapeDtypeStruct((n, c, hw), x_r.dtype),
        grid=(g, n_hw),
        in_specs=[pl.BlockSpec((tn, c, thw), lambda gi, li: (gi, 0, li)),
                  pl.BlockSpec((2, c, 1), lambda gi, li: (0, 0, 0))],
        out_specs=pl.BlockSpec((tn, c, thw), lambda gi, li: (gi, 0, li)),
        compiler_params=pltpu.CompilerParams(
            dimension_semantics=("parallel", "parallel"),
            vmem_limit_bytes=vmem_limit),
    )(x_r, params)

    return y_r.reshape(n, c, h, w)


# ----------------------------------------------------------------------------
# Pure-JAX reference (mirrors the PyTorch forward in training mode)
# ----------------------------------------------------------------------------
def abr_reference(x, weight, bias, running_mean, running_var, *,
                  eps=1e-5, activation_param=0.01):
    c = x.shape[1]
    xt = jnp.transpose(x, (1, 0, 2, 3)).reshape(c, -1)
    mean_b = xt.mean(axis=1)
    var_unbiased = xt.var(axis=1, ddof=1)
    var_biased = xt.var(axis=1)
    running_std = jnp.sqrt(running_var + eps)
    r = jnp.sqrt(var_unbiased + eps) / running_std
    d = (mean_b - running_mean) / running_std
    w_eff = weight * r
    b_eff = bias + weight * d
    xn = (x - mean_b[None, :, None, None]) / jnp.sqrt(
        var_biased[None, :, None, None] + eps)
    y = xn * w_eff[None, :, None, None] + b_eff[None, :, None, None]
    return jnp.where(y >= 0.0, y, activation_param * y)


if __name__ == "__main__":
    key = jax.random.PRNGKey(0)
    ks = jax.random.split(key, 5)

    def make_case(shape):
        _, c, _, _ = shape
        x = jax.random.normal(ks[0], shape, dtype=jnp.float32) * 2.0 + 0.5
        weight = 1.0 + 0.1 * jax.random.normal(ks[1], (c,), dtype=jnp.float32)
        bias = 0.1 * jax.random.normal(ks[2], (c,), dtype=jnp.float32)
        rm = 0.2 * jax.random.normal(ks[3], (c,), dtype=jnp.float32)
        rv = jax.random.uniform(ks[4], (c,), dtype=jnp.float32,
                                minval=0.5, maxval=1.5)
        return x, weight, bias, rm, rv

    # Case 1: fused single-pass path (activation fully VMEM-resident).
    x, wgt, b, rm, rv = make_case((2, 4, 16, 16))
    y = jax.block_until_ready(abr_forward(x, wgt, b, rm, rv))
    y_ref = abr_reference(x, wgt, b, rm, rv)
    assert y.shape == (2, 4, 16, 16)
    assert jnp.allclose(y, y_ref, rtol=1e-4, atol=1e-4), "case-1 (fused) mismatch"

    # Case 2: streaming two-pass path, ragged H*W (13*13=169) with a tiny
    # VMEM budget to force multi-step accumulation + masked final tile.
    x2, w2, b2, rm2, rv2 = make_case((2, 4, 13, 13))
    y2 = jax.block_until_ready(
        abr_forward(x2, w2, b2, rm2, rv2, allow_fused=False,
                    vmem_budget_bytes=8 * 1024))
    y2_ref = abr_reference(x2, w2, b2, rm2, rv2)
    assert jnp.allclose(y2, y2_ref, rtol=1e-4, atol=1e-4), "case-2 mismatch"

    # Case 3: streaming path with a batch block (tn=2) and a whole-row lane
    # tile (576) that is not a multiple of the accumulator width.
    x3, w3, b3, rm3, rv3 = make_case((4, 4, 24, 24))
    y3 = jax.block_until_ready(
        abr_forward(x3, w3, b3, rm3, rv3, allow_fused=False))
    y3_ref = abr_reference(x3, w3, b3, rm3, rv3)
    assert jnp.allclose(y3, y3_ref, rtol=1e-4, atol=1e-4), "case-3 mismatch"

    # Case 4: eval mode (running statistics, no renorm folding).
    y4 = jax.block_until_ready(abr_forward(x, wgt, b, rm, rv, training=False))
    scale4 = wgt / jnp.sqrt(rv + 1e-5)
    shift4 = b - rm * scale4
    y4_ref = x * scale4[None, :, None, None] + shift4[None, :, None, None]
    y4_ref = jnp.where(y4_ref >= 0.0, y4_ref, 0.01 * y4_ref)
    assert jnp.allclose(y4, y4_ref, rtol=1e-4, atol=1e-4), "case-4 mismatch"

    print("KERNEL_OK")
</pallas_src>

<mosaic_0001>
module attributes {stable_mosaic.version = 11 : i64} {
  func.func @kernel(%arg0: memref<2x4x256xf32, #tpu.memory_space<vmem>>, %arg1: memref<4x4x1xf32, #tpu.memory_space<vmem>>, %arg2: memref<2x4x256xf32, #tpu.memory_space<vmem>>) attributes {dimension_semantics = [], scalar_prefetch = 0 : i64, scratch_operands = 0 : i64, tpu.core_type = #tpu.core_type<tc>} {
    %c0 = arith.constant 0 : index
    %c0_0 = arith.constant 0 : index
    %c0_1 = arith.constant 0 : index
    %0 = vector.load %arg0[%c0, %c0_0, %c0_1] : memref<2x4x256xf32, #tpu.memory_space<vmem>>, vector<2x4x256xf32>
    %c0_2 = arith.constant 0 : index
    %c0_3 = arith.constant 0 : index
    %c0_4 = arith.constant 0 : index
    %1 = vector.load %arg1[%c0_2, %c0_3, %c0_4] : memref<4x4x1xf32, #tpu.memory_space<vmem>>, vector<1x4x1xf32>
    %2 = vector.shape_cast %1 : vector<1x4x1xf32> to vector<4x1xf32>
    %c1 = arith.constant 1 : index
    %c0_5 = arith.constant 0 : index
    %c0_6 = arith.constant 0 : index
    %3 = vector.load %arg1[%c1, %c0_5, %c0_6] : memref<4x4x1xf32, #tpu.memory_space<vmem>>, vector<1x4x1xf32>
    %4 = vector.shape_cast %3 : vector<1x4x1xf32> to vector<4x1xf32>
    %c2 = arith.constant 2 : index
    %c0_7 = arith.constant 0 : index
    %c0_8 = arith.constant 0 : index
    %5 = vector.load %arg1[%c2, %c0_7, %c0_8] : memref<4x4x1xf32, #tpu.memory_space<vmem>>, vector<1x4x1xf32>
    %6 = vector.shape_cast %5 : vector<1x4x1xf32> to vector<4x1xf32>
    %c3 = arith.constant 3 : index
    %c0_9 = arith.constant 0 : index
    %c0_10 = arith.constant 0 : index
    %7 = vector.load %arg1[%c3, %c0_9, %c0_10] : memref<4x4x1xf32, #tpu.memory_space<vmem>>, vector<1x4x1xf32>
    %8 = vector.shape_cast %7 : vector<1x4x1xf32> to vector<4x1xf32>
    %9 = vector.shape_cast %2 : vector<4x1xf32> to vector<1x4x1xf32>
    %10 = vector.broadcast %9 : vector<1x4x1xf32> to vector<2x4x256xf32>
    %11 = arith.subf %0, %10 : vector<2x4x256xf32>
    %cst = arith.constant dense<0.000000e+00> : vector<4x256xf32>
    %12 = vector.multi_reduction <add>, %11, %cst [0] : vector<2x4x256xf32> to vector<4x256xf32>
    %13 = arith.mulf %11, %11 : vector<2x4x256xf32>
    %cst_11 = arith.constant dense<0.000000e+00> : vector<4x256xf32>
    %14 = vector.multi_reduction <add>, %13, %cst_11 [0] : vector<2x4x256xf32> to vector<4x256xf32>
    %cst_12 = arith.constant dense<0.000000e+00> : vector<4xf32>
    %15 = vector.multi_reduction <add>, %12, %cst_12 [1] : vector<4x256xf32> to vector<4xf32>
    %16 = vector.shape_cast %15 : vector<4xf32> to vector<4x1xf32>
    %cst_13 = arith.constant dense<0.000000e+00> : vector<4xf32>
    %17 = vector.multi_reduction <add>, %14, %cst_13 [1] : vector<4x256xf32> to vector<4xf32>
    %18 = vector.shape_cast %17 : vector<4xf32> to vector<4x1xf32>
    %cst_14 = arith.constant 5.120000e+02 : f32
    %19 = vector.broadcast %cst_14 : f32 to vector<4x1xf32>
    %20 = arith.divf %16, %19 : vector<4x1xf32>
    %cst_15 = arith.constant 5.120000e+02 : f32
    %21 = vector.broadcast %cst_15 : f32 to vector<4x1xf32>
    %22 = arith.divf %18, %21 : vector<4x1xf32>
    %23 = arith.mulf %20, %20 : vector<4x1xf32>
    %24 = arith.subf %22, %23 : vector<4x1xf32>
    %cst_16 = arith.constant 0.000000e+00 : f32
    %25 = vector.broadcast %cst_16 : f32 to vector<4x1xf32>
    %26 = arith.maximumf %24, %25 : vector<4x1xf32>
    %cst_17 = arith.constant 5.120000e+02 : f32
    %27 = vector.broadcast %cst_17 : f32 to vector<4x1xf32>
    %28 = arith.mulf %27, %20 : vector<4x1xf32>
    %29 = arith.mulf %28, %20 : vector<4x1xf32>
    %30 = arith.subf %18, %29 : vector<4x1xf32>
    %cst_18 = arith.constant 5.110000e+02 : f32
    %31 = vector.broadcast %cst_18 : f32 to vector<4x1xf32>
    %32 = arith.divf %30, %31 : vector<4x1xf32>
    %cst_19 = arith.constant 0.000000e+00 : f32
    %33 = vector.broadcast %cst_19 : f32 to vector<4x1xf32>
    %34 = arith.maximumf %32, %33 : vector<4x1xf32>
    %cst_20 = arith.constant 9.99999974E-6 : f32
    %35 = vector.broadcast %cst_20 : f32 to vector<4x1xf32>
    %36 = arith.addf %4, %35 : vector<4x1xf32>
    %37 = math.sqrt %36 : vector<4x1xf32>
    %cst_21 = arith.constant 9.99999974E-6 : f32
    %38 = vector.broadcast %cst_21 : f32 to vector<4x1xf32>
    %39 = arith.addf %34, %38 : vector<4x1xf32>
    %40 = math.sqrt %39 : vector<4x1xf32>
    %41 = arith.divf %40, %37 : vector<4x1xf32>
    %42 = arith.divf %20, %37 : vector<4x1xf32>
    %43 = arith.mulf %6, %41 : vector<4x1xf32>
    %44 = arith.mulf %6, %42 : vector<4x1xf32>
    %45 = arith.addf %8, %44 : vector<4x1xf32>
    %cst_22 = arith.constant 9.99999974E-6 : f32
    %46 = vector.broadcast %cst_22 : f32 to vector<4x1xf32>
    %47 = arith.addf %26, %46 : vector<4x1xf32>
    %48 = math.sqrt %47 : vector<4x1xf32>
    %49 = arith.divf %43, %48 : vector<4x1xf32>
    %50 = arith.addf %2, %20 : vector<4x1xf32>
    %51 = arith.mulf %50, %49 : vector<4x1xf32>
    %52 = arith.subf %45, %51 : vector<4x1xf32>
    %53 = vector.shape_cast %49 : vector<4x1xf32> to vector<1x4x1xf32>
    %54 = vector.broadcast %53 : vector<1x4x1xf32> to vector<2x4x256xf32>
    %55 = arith.mulf %0, %54 : vector<2x4x256xf32>
    %56 = vector.shape_cast %52 : vector<4x1xf32> to vector<1x4x1xf32>
    %57 = vector.broadcast %56 : vector<1x4x1xf32> to vector<2x4x256xf32>
    %58 = arith.addf %55, %57 : vector<2x4x256xf32>
    %cst_23 = arith.constant 0.000000e+00 : f32
    %59 = vector.broadcast %cst_23 : f32 to vector<2x4x256xf32>
    %60 = arith.cmpf oge, %58, %59 : vector<2x4x256xf32>
    %cst_24 = arith.constant 0.00999999977 : f32
    %61 = vector.broadcast %cst_24 : f32 to vector<2x4x256xf32>
    %62 = arith.mulf %61, %58 : vector<2x4x256xf32>
    %63 = arith.select %60, %58, %62 : vector<2x4x256xi1>, vector<2x4x256xf32>
    %c0_25 = arith.constant 0 : index
    %c0_26 = arith.constant 0 : index
    %c0_27 = arith.constant 0 : index
    %64 = vector.load %arg2[%c0_25, %c0_26, %c0_27] : memref<2x4x256xf32, #tpu.memory_space<vmem>>, vector<2x4x256xf32>
    tpu.vector_store %arg2[%c0_25, %c0_26, %c0_27], %63 {strides = array<i32>} : memref<2x4x256xf32, #tpu.memory_space<vmem>>, vector<2x4x256xf32>,
    return
  }
}

</mosaic_0001>

<bundles_post_ra>
// kernel: abr_forward.1
= control target key start
LH: loop header
LB: loop body
LE: loop exit
PB: predicated region body
PF: predicated region fallthrough
CT: control target
= control target key end

     0   :  { %v240_v0 = vmov 0   ;;  %v241_v2 = vmov 839922192   ;;  %vm44_vm0 = vcmask 1043456   ;;  %v242_v40 = vmov 512.0   ;;  %s320_s1 = inlined_call_operand.vmem [shape: f32[4,4,1], index: 1, kind: input, shape index: {}]   ;;  %s321_s0 = inlined_call_operand.vmem [shape: f32[2,4,256], index: 0, kind: input, shape index: {}]   ;;  %s322_s2 = inlined_call_operand.vmem [shape: f32[2,4,256], index: 2, kind: output, shape index: {}]  }
   0x1   :  { %223 = vset.pattern.permute.xlu0 %v240_v0  ;;  %v262_v1 = vld [vmem:[%s320_s1] sm:$0xf]  ;;  %224 = vset.pattern.permute.xlu1 %v240_v0  ;;  %v25_v3 = vunpack.c.l.s4 %v241_v2  ;;  %v275_v7 = vld [vmem:[%s321_s0 + $0x8] sm:$0xff]  ;;  %v216_v39 = vld [vmem:[%s320_s1 + $0x4] sm:$0xf]  ;;  %226 = vrcp.f32 %v242_v40  ;;  %v243_v45 = vmov 511.0  }
   0x2   :  { %22 = vperm.xlu0 %223, %v262_v1   ;;  %225 = vset.pattern.permute.xlu2 %v240_v0  ;;  %v270_v6 = vld [vmem:[%s321_s0] sm:$0xff]  ;;  %v106_v41 = vadd.f32 1e-05, %v216_v39 }
   0x3   :  { %v265_v4 = vunpack.c.0.s8 %v25_v3 }
   0x4   :  { %228 = vrsqrt.f32 %v106_v41  ;;  %vm114_vm3 = vcmp.eq.f32.partialorder %v106_v41, inf  ;;  %vm116_vm4 = vcmp.eq.f32.partialorder %v106_v41, 0.0 }
   0x5   :  { %230 = vrcp.f32 %v243_v45 }
   0x7   :  { %v227_v42 = vpop.eup %226 }
   0x8   :  { %v83_v43 = vmul.f32 512.0, %v227_v42  ;;  %vm87_vm1 = vweird.f32 %v227_v42 }
   0xa   :  { %v229_v44 = vpop.eup %228  ;;  %v84_v46 = vsub.f32 1.0, %v83_v43 }
   0xb   :  { %v108_v47 = vmul.f32 %v229_v44, %v106_v41  ;;  %v231_v48 = vpop.eup %230 }
   0xc   :  { %v85_v49 = vmul.f32 %v227_v42, %v84_v46  ;;  %v98_v51 = vmul.f32 511.0, %v231_v48  ;;  %vm102_vm2 = vweird.f32 %v231_v48 }
   0xd   :  { %v109_v50 = vmul.f32 %v229_v44, %v108_v47 }
   0xe   :  { %v86_v52 = vadd.f32 %v227_v42, %v85_v49  ;;  %v99_v54 = vsub.f32 1.0, %v98_v51 }
   0xf   :  { %v110_v53 = vmul.f32 0.5, %v109_v50 }
  0x10   :  { %v88_v55 = vsel %vm87_vm1, %v227_v42, %v86_v52  ;;  %v100_v59 = vmul.f32 %v231_v48, %v99_v54 }
  0x11   :  { %v111_v56 = vsub.f32 1.5, %v110_v53 }
  0x12   :  { %v101_v62 = vadd.f32 %v231_v48, %v100_v59 }
  0x13   :  { %v112_v60 = vmul.f32 %v229_v44, %v111_v56 }
  0x14   :  { %v103_v2 = vsel %vm102_vm2, %v231_v48, %v101_v62 }
  0x15   :  { %v113_v63 = vmul.f32 %v112_v60, %v106_v41 }
  0x74   :  { %v23_v5 = vpop.permute.xlu0 %22 }
  0x75   :  { %v27_v8 = vperm.slane %v23_v5, %v265_v4 }
  0x77   :  { %v29_v9 = vsub.f32 %v270_v6, %v27_v8  ;;  %v30_v10 = vsub.f32 %v275_v7, %v27_v8 }
  0x79   :  { %33 = vst [vmem:[#allocation1] ss:$2 sm:$0xff] %v29_v9  ;;  %v51_v11 = vmul.f32 %v29_v9, %v29_v9  ;;  %v52_v14 = vmul.f32 %v30_v10, %v30_v10 }
  0x7a   :  { %37 = vst [vmem:[#allocation1 + $0x10] ss:$2 sm:$0xff] %v30_v10  ;;  %v117_v10 = vand.u32 2147483648, %v106_v41 }
  0x80   :  { %v34_v12 = vld.sshfl [vmem:[#allocation1] sm:$0xff pattern:$0x75316420]  ;;  %v35_v13 = vld.sshfl [vmem:[#allocation1 + $0x8] sm:$0xff pattern:$0x75316420] }
  0x81   :  { %v38_v15 = vld.sshfl [vmem:[#allocation1 + $0x10] sm:$0xff pattern:$0x75316420]  ;;  %v39_v16 = vld.sshfl [vmem:[#allocation1 + $0x18] sm:$0xff pattern:$0x75316420] }
  0x82   :  { %v45_v17 = vsel %vm44_vm0, %v34_v12, 0.0  ;;  %v46_v18 = vsel %vm44_vm0, %v38_v15, 0.0  ;;  %v48_v19 = vsel %vm44_vm0, %v35_v13, 0.0  ;;  %v49_v20 = vsel %vm44_vm0, %v39_v16, 0.0  ;;  %55 = vst [vmem:[#allocation1] ss:$2 sm:$0xff] %v51_v11 }
  0x83   :  { %v47_v21 = vadd.f32 %v46_v18, %v45_v17  ;;  %v50_v22 = vadd.f32 %v49_v20, %v48_v19  ;;  %59 = vst [vmem:[#allocation1 + $0x10] ss:$2 sm:$0xff] %v52_v14  ;;  %v115_v11 = vsel %vm114_vm3, %v106_v41, %v113_v63 }
  0x84   :  { %v118_v16 = vsel %vm116_vm4, %v117_v10, %v115_v11 }
  0x85   :  { %v72_v23 = vsel %vm44_vm0, %v47_v21, 0.0  ;;  %v73_v24 = vsel %vm44_vm0, %v50_v22, 0.0  ;;  %232 = vrcp.f32 %v118_v16  ;;  %vm137_vm6 = vweird.f32 %v118_v16 }
  0x86   :  { %v74_v25 = vadd.f32 %v73_v24, %v72_v23  ;;  %v141_v41 = vand.u32 2147483647, %v118_v16 }
  0x88   :  { %75 = vadd.xlane.f32.xlu0 %v74_v25  ;;  %vm142_vm11 = vcmp.eq.f32.partialorder %v141_v41, 8.507059e+37 }
  0x89   :  { %v56_v26 = vld.sshfl [vmem:[#allocation1] sm:$0xff pattern:$0x75316420]  ;;  %v57_v27 = vld.sshfl [vmem:[#allocation1 + $0x8] sm:$0xff pattern:$0x75316420] }
  0x8a   :  { %v60_v28 = vld.sshfl [vmem:[#allocation1 + $0x10] sm:$0xff pattern:$0x75316420]  ;;  %v61_v29 = vld.sshfl [vmem:[#allocation1 + $0x18] sm:$0xff pattern:$0x75316420] }
  0x8b   :  { %v66_v30 = vsel %vm44_vm0, %v56_v26, 0.0  ;;  %v67_v31 = vsel %vm44_vm0, %v60_v28, 0.0  ;;  %v69_v32 = vsel %vm44_vm0, %v57_v27, 0.0  ;;  %v70_v33 = vsel %vm44_vm0, %v61_v29, 0.0  ;;  %v233_v19 = vpop.eup %232 }
  0x8c   :  { %v68_v34 = vadd.f32 %v67_v31, %v66_v30  ;;  %v71_v35 = vadd.f32 %v70_v33, %v69_v32  ;;  %v133_v25 = vmul.f32 %v233_v19, %v118_v16  ;;  %vm138_vm7 = vweird.f32 %v233_v19 }
  0x8d   :  { %vm139_vm9 = vmor %vm137_vm6, %vm138_vm7 }
  0x8e   :  { %v77_v36 = vsel %vm44_vm0, %v68_v34, 0.0  ;;  %v78_v37 = vsel %vm44_vm0, %v71_v35, 0.0  ;;  %v134_v29 = vsub.f32 1.0, %v133_v25 }
  0x8f   :  { %v79_v38 = vadd.f32 %v78_v37, %v77_v36 }
  0x90   :  { %v135_v33 = vmul.f32 %v233_v19, %v134_v29 }
  0x91   :  { %80 = vadd.xlane.f32.xlu1 %v79_v38  ;;  %v143_v38 = vand.u32 2147483648, %v118_v16 }
  0x92   :  { %v136_v40 = vadd.f32 %v233_v19, %v135_v33 }
  0x93   :  { %v144_v43 = vor.u32 1.1754944e-38, %v143_v38 }
  0x94   :  { %v140_v44 = vsel %vm139_vm9, %v233_v19, %v136_v40 }
  0x95   :  { %v145_v48 = vsel %vm142_vm11, %v144_v43, %v140_v44 }
  0xfb   :  { %v76_v57 = vpop.xlane.xlu0 %75 }
  0xfc   :  { %v295_v58 = vmul.f32 %v88_v55, %v76_v57  ;;  %v217_v57 = vld [vmem:[%s320_s1 + $0x8] sm:$0xf] }
  0xfe   :  { %v94_v61 = vmul.f32 512.0, %v295_v58  ;;  %v91_v8 = vmul.f32 %v295_v58, %v295_v58  ;;  %v147_v53 = vmul.f32 %v145_v48, %v295_v58 }
 0x100   :  { %v95_v0 = vmul.f32 %v94_v61, %v295_v58  ;;  %v149_v63 = vmul.f32 %v217_v57, %v147_v53 }
 0x104   :  { %v81_v3 = vpop.xlane.xlu1 %80 }
 0x105   :  { %v90_v5 = vmul.f32 %v88_v55, %v81_v3  ;;  %v96_v9 = vsub.f32 %v81_v3, %v95_v0 }
 0x107   :  { %v92_v12 = vsub.f32 %v90_v5, %v91_v8  ;;  %v104_v13 = vmul.f32 %v103_v2, %v96_v9  ;;  %v218_v2 = vld [vmem:[%s320_s1 + $0xc] sm:$0xf]  ;;  %v179_v5 = vadd.f32 %v295_v58, %v262_v1 }
 0x108   :  { %v150_v8 = vadd.f32 %v218_v2, %v149_v63 }
 0x109   :  { %v93_v14 = vmax.f32 %v92_v12, 0.0  ;;  %v105_v15 = vmax.f32 %v104_v13, 0.0 }
 0x10b   :  { %v119_v17 = vadd.f32 1e-05, %v105_v15  ;;  %v151_v18 = vadd.f32 1e-05, %v93_v14 }
 0x10d   :  { %234 = vrsqrt.f32 %v119_v17  ;;  %vm159_vm5 = vcmp.eq.f32.partialorder %v151_v18, inf  ;;  %v162_v36 = vand.u32 2147483648, %v151_v18  ;;  %vm161_vm8 = vcmp.eq.f32.partialorder %v151_v18, 0.0 }
 0x10e   :  { %236 = vrsqrt.f32 %v151_v18  ;;  %vm127_vm10 = vcmp.eq.f32.partialorder %v119_v17, inf  ;;  %v130_v47 = vand.u32 2147483648, %v119_v17  ;;  %vm129_vm12 = vcmp.eq.f32.partialorder %v119_v17, 0.0 }
 0x113   :  { %v235_v20 = vpop.eup %234 }
 0x114   :  { %v237_v21 = vpop.eup %236  ;;  %v121_v22 = vmul.f32 %v235_v20, %v119_v17 }
 0x115   :  { %v153_v23 = vmul.f32 %v237_v21, %v151_v18 }
 0x116   :  { %v122_v24 = vmul.f32 %v235_v20, %v121_v22 }
 0x117   :  { %v154_v26 = vmul.f32 %v237_v21, %v153_v23 }
 0x118   :  { %v123_v27 = vmul.f32 0.5, %v122_v24 }
 0x119   :  { %v155_v28 = vmul.f32 0.5, %v154_v26 }
 0x11a   :  { %v124_v31 = vsub.f32 1.5, %v123_v27 }
 0x11b   :  { %v156_v30 = vsub.f32 1.5, %v155_v28 }
 0x11c   :  { %v125_v35 = vmul.f32 %v235_v20, %v124_v31 }
 0x11d   :  { %v157_v32 = vmul.f32 %v237_v21, %v156_v30 }
 0x11e   :  { %v126_v42 = vmul.f32 %v125_v35, %v119_v17 }
 0x11f   :  { %v158_v34 = vmul.f32 %v157_v32, %v151_v18 }
 0x120   :  { %v128_v45 = vsel %vm127_vm10, %v119_v17, %v126_v42 }
 0x121   :  { %v160_v37 = vsel %vm159_vm5, %v151_v18, %v158_v34  ;;  %v131_v50 = vsel %vm129_vm12, %v130_v47, %v128_v45 }
 0x122   :  { %v163_v39 = vsel %vm161_vm8, %v162_v36, %v160_v37  ;;  %v146_v54 = vmul.f32 %v145_v48, %v131_v50 }
 0x123   :  { %238 = vrcp.f32 %v163_v39  ;;  %v175_v52 = vand.u32 2147483648, %v163_v39  ;;  %v173_v56 = vand.u32 2147483647, %v163_v39  ;;  %vm169_vm14 = vweird.f32 %v163_v39 }
 0x124   :  { %v148_v61 = vmul.f32 %v217_v57, %v146_v54 }
 0x125   :  { %v176_v60 = vor.u32 1.1754944e-38, %v175_v52  ;;  %vm174_vm0 = vcmp.eq.f32.partialorder %v173_v56, 8.507059e+37 }
 0x129   :  { %v239_v46 = vpop.eup %238 }
 0x12a   :  { %v165_v49 = vmul.f32 %v239_v46, %v163_v39  ;;  %vm170_vm13 = vweird.f32 %v239_v46 }
 0x12b   :  { %vm171_vm15 = vmor %vm169_vm14, %vm170_vm13 }
 0x12c   :  { %v166_v51 = vsub.f32 1.0, %v165_v49 }
 0x12e   :  { %v167_v55 = vmul.f32 %v239_v46, %v166_v51 }
 0x130   :  { %v168_v59 = vadd.f32 %v239_v46, %v167_v55 }
 0x132   :  { %v172_v62 = vsel %vm171_vm15, %v239_v46, %v168_v59 }
 0x133   :  { %v177_v0 = vsel %vm174_vm0, %v176_v60, %v172_v62 }
 0x134   :  { %v178_v3 = vmul.f32 %v177_v0, %v148_v61 }
 0x136   :  { %184 = vperm.xlu1 %224, %v178_v3   ;;  %v180_v9 = vmul.f32 %v179_v5, %v178_v3 }
 0x138   :  { %v181_v10 = vsub.f32 %v150_v8, %v180_v9 }
 0x13a   :  { %195 = vperm.xlu2 %225, %v181_v10  }
 0x194   :  { %v196_v11 = vpop.permute.xlu2 %195 }
 0x195   :  { %v200_v14 = vperm.slane %v196_v11, %v265_v4 }
 0x1a8   :  { %v185_v12 = vpop.permute.xlu1 %184 }
 0x1a9   :  { %v189_v13 = vperm.slane %v185_v12, %v265_v4 }
 0x1ab   :  { %v191_v15 = vmul.f32 %v189_v13, %v270_v6  ;;  %v192_v16 = vmul.f32 %v189_v13, %v275_v7 }
 0x1ad   :  { %v202_v17 = vadd.f32 %v200_v14, %v191_v15  ;;  %v203_v18 = vadd.f32 %v200_v14, %v192_v16 }
 0x1af   :  { %vm204_vm1 = vcmp.ge.f32.partialorder %v202_v17, 0.0  ;;  %vm205_vm2 = vcmp.ge.f32.partialorder %v203_v18, 0.0  ;;  %v206_v1 = vmul.f32 0.01, %v202_v17  ;;  %v207_v58 = vmul.f32 0.01, %v203_v18 }
 0x1b1   :  { %v208_v19 = vsel %vm204_vm1, %v202_v17, %v206_v1  ;;  %v209_v20 = vsel %vm205_vm2, %v203_v18, %v207_v58 }
 0x1b2   :  { %210 = vst [vmem:[%s322_s2] sm:$0xff] %v208_v19 }
 0x1b3   :  { %211 = vst [vmem:[%s322_s2 + $0x8] sm:$0xff] %v209_v20 }

</bundles_post_ra>
